<compile_context>
chip_gen: v6e
topology: v6e:2x2x1
jax: 0.10.0
libtpu: 0.0.40
codegen_flags: <defaults>
</compile_context>

<pallas_src>
import functools
import math

import jax
import jax.numpy as jnp
import numpy as np
from jax.experimental import pallas as pl
from jax.experimental.pallas import tpu as pltpu


def make_pe_table(d_model, max_len=20, dtype=jnp.float32):
    """Sinusoidal PE buffer, identical to the PyTorch module's __init__."""
    position = jnp.arange(max_len, dtype=jnp.float32)[:, None]                 # [L, 1]
    div_term = jnp.exp(jnp.arange(0, d_model, 2, dtype=jnp.float32)
                       * (-(math.log(10000.0) / d_model)))                     # [D/2]
    ang = position * div_term                                                  # [L, D/2]
    pe = jnp.zeros((max_len, d_model), jnp.float32)
    pe = pe.at[:, 0::2].set(jnp.sin(ang))
    pe = pe.at[:, 1::2].set(jnp.cos(ang))
    return pe.astype(dtype)


# ----------------------------- kernels ---------------------------------------


def _pe_add_kernel(x_ref, pe_ref, o_ref):
    # x_ref: (Rb, Lb); pe_ref: (1, Lb) broadcast over the batch/sublane axis.
    o_ref[...] = (x_ref[...] + pe_ref[...]).astype(o_ref.dtype)


def _pe_add_dropout_kernel(x_ref, pe_ref, bits_ref, o_ref, *, keep_prob):
    # Integer-only keep decision: low 23 random bits < keep_prob * 2^23.
    inv_keep = 1.0 / keep_prob                                  # Python constant
    thresh = jnp.uint32(int(round(keep_prob * float(1 << 23))))
    y = x_ref[...] + pe_ref[...]
    keep = (bits_ref[...] & jnp.uint32(0x7FFFFF)) < thresh
    o_ref[...] = jnp.where(keep, y * inv_keep, jnp.zeros_like(y)).astype(o_ref.dtype)


# --------------------------- tiling helpers -----------------------------------

_FALLBACK_VMEM_CAP = 64 * 1024 * 1024   # conservative (v7x per-TC physical VMEM)


def _vmem_capacity_bytes():
    try:
        info = pltpu.get_tpu_info()
        cap = getattr(info, "vmem_capacity_bytes", None)
        if cap:
            return int(cap)
    except Exception:
        pass
    return _FALLBACK_VMEM_CAP


def _choose_tiles(B, L, itemsize, *, with_bits):
    """Pick (Rb, Lb) block sizes plus a vmem_limit_bytes for the real footprint."""
    packing = max(8, 32 // max(1, itemsize))           # f32 -> 8, bf16 -> 16, int8 -> 32
    cap = _vmem_capacity_bytes()
    budget = min(cap // 2, 48 * 1024 * 1024)           # total live VMEM target
    per_elem = 4 * itemsize + (8 if with_bits else 0)  # 2x x + 2x out (+ 2x u32 bits)

    pe_full = 2 * L * itemsize                          # double-buffered (1, L) pe row
    rows = (budget - pe_full) // max(1, L * per_elem)
    if rows >= B:
        Rb, Lb = B, L
    elif rows >= packing:
        Rb, Lb = (rows // packing) * packing, L
    else:
        Rb = B if B <= packing else packing
        denom = Rb * per_elem + 2 * itemsize
        Lb = min(L, max(128, (budget // denom) // 128 * 128))

    # Megacore (v7x): if everything fits in one step but the problem is big, force
    # >= 2 "parallel" steps so both TensorCores get work (no effect on v5e/v6e).
    n_steps = (-(-B // Rb)) * (-(-L // Lb))
    if n_steps == 1 and B * L * itemsize > (4 << 20):
        if B >= 2 * packing:
            Rb = max(packing, ((B // 2 + packing - 1) // packing) * packing)
        elif L >= 256:
            Lb = max(128, ((L // 2) // 128) * 128)

    footprint = Rb * Lb * per_elem + 2 * Lb * itemsize
    vmem_limit = int(min(cap, max(16 * 1024 * 1024, footprint + (2 << 20))))
    return Rb, Lb, vmem_limit


# ------------------------------ wrapper ---------------------------------------


def positional_encoding(x, pe_table, *, dropout_p=0.0, training=False, seed=0,
                        min_pallas_bytes=256 * 1024):
    """Forward of PositionalEncoding: dropout(x + pe[:, :S])."""
    B, S, D = x.shape
    max_len, d_model = pe_table.shape
    assert D == d_model, "x feature dim must equal d_model"
    assert S <= max_len, "sequence length exceeds max_len of the PE buffer"

    apply_dropout = bool(training) and float(dropout_p) > 0.0
    if apply_dropout and float(dropout_p) >= 1.0:
        return jnp.zeros_like(x)

    pe_slice = pe_table[:S].astype(x.dtype)
    itemsize = jnp.dtype(x.dtype).itemsize
    total_bytes = B * S * D * itemsize

    # Tiny inputs: the pallas_call fixed cost dominates -> plain fused XLA elementwise.
    if total_bytes < min_pallas_bytes:
        y = x + pe_slice[None]
        if apply_dropout:
            keep = jax.random.bernoulli(jax.random.PRNGKey(seed),
                                        1.0 - float(dropout_p), y.shape)
            y = jnp.where(keep, y / (1.0 - float(dropout_p)), 0.0).astype(x.dtype)
        return y

    # Lane-dense flattening: [B, S, D] -> [B, S*D].
    L = S * D
    x2 = x.reshape(B, L)
    pe_row = pe_slice.reshape(1, L)

    Rb, Lb, vmem_limit = _choose_tiles(B, L, itemsize, with_bits=apply_dropout)
    grid = (-(-B // Rb), -(-L // Lb))

    x_spec = pl.BlockSpec((Rb, Lb), lambda i, j: (i, j))
    pe_spec = pl.BlockSpec((1, Lb), lambda i, j: (0, j))
    out_spec = pl.BlockSpec((Rb, Lb), lambda i, j: (i, j))
    cparams = pltpu.CompilerParams(
        dimension_semantics=("parallel", "parallel"),
        vmem_limit_bytes=vmem_limit,
    )
    bytes_accessed = (2 * B * L + L) * itemsize + (B * L * 4 if apply_dropout else 0)
    cost = pl.CostEstimate(flops=(2 if apply_dropout else 1) * B * L,
                           transcendentals=0,
                           bytes_accessed=bytes_accessed)
    out_shape = jax.ShapeDtypeStruct((B, L), x.dtype)

    if not apply_dropout:
        out2 = pl.pallas_call(
            _pe_add_kernel,
            out_shape=out_shape,
            grid=grid,
            in_specs=[x_spec, pe_spec],
            out_specs=out_spec,
            input_output_aliases={0: 0},          # reuse x's HBM buffer for the output
            compiler_params=cparams,
            cost_estimate=cost,
        )(x2, pe_row)
    else:
        # TODO(synk): torch's nn.Dropout RNG stream cannot be reproduced; random bits
        # come from jax.random (host-side key) so the kernel also runs in interpret mode
        # where the TPU hardware PRNG primitives do not lower.
        keep_prob = 1.0 - float(dropout_p)
        bits = jax.random.bits(jax.random.PRNGKey(seed), (B, L), dtype=jnp.uint32)
        bits_spec = pl.BlockSpec((Rb, Lb), lambda i, j: (i, j))
        out2 = pl.pallas_call(
            functools.partial(_pe_add_dropout_kernel, keep_prob=keep_prob),
            out_shape=out_shape,
            grid=grid,
            in_specs=[x_spec, pe_spec, bits_spec],
            out_specs=out_spec,
            input_output_aliases={0: 0},
            compiler_params=cparams,
            cost_estimate=cost,
        )(x2, pe_row, bits)

    return out2.reshape(B, S, D)


# ------------------------------- self test ------------------------------------

if __name__ == "__main__":
    # module config: d_model=32, dropout=0.1, max_len=20 ; input x: [B=2, S=8, D=32]
    d_model, max_len, dropout_p = 32, 20, 0.1
    B, S = 2, 8

    key = jax.random.PRNGKey(0)
    x = jax.random.normal(key, (B, S, d_model), jnp.float32)
    pe_table = make_pe_table(d_model, max_len)

    # Reference computed up-front (pure XLA).
    ref = np.asarray(jax.block_until_ready(x + pe_table[:S][None, :, :]))

    # --- eval mode (dropout is identity): exact check against x + pe ---
    # min_pallas_bytes=0 forces the Pallas path even at this tiny test shape.
    y_eval = positional_encoding(x, pe_table, dropout_p=dropout_p, training=False,
                                 min_pallas_bytes=0)
    y_eval = np.asarray(jax.block_until_ready(y_eval))
    np.testing.assert_allclose(y_eval, ref, rtol=1e-6, atol=1e-6)

    # --- training mode: fused dropout; every element must be either exactly dropped
    #     (0) or the kept value scaled by 1/(1-p). ---
    y_train = positional_encoding(x, pe_table, dropout_p=dropout_p, training=True,
                                  seed=42, min_pallas_bytes=0)
    y_train = np.asarray(jax.block_until_ready(y_train))
    assert y_train.shape == (B, S, d_model)
    expected_kept = ref / (1.0 - dropout_p)
    ok = (np.abs(y_train) <= 1e-6) | (np.abs(y_train - expected_kept)
                                      <= 1e-4 * (1.0 + np.abs(expected_kept)))
    assert ok.all(), "dropout produced values that are neither dropped nor scaled-kept"
    keep_rate = float((np.abs(y_train) > 1e-6).mean())
    assert 0.6 <= keep_rate <= 1.0, f"implausible keep rate {keep_rate}"

    print("KERNEL_OK")
</pallas_src>

<mosaic_0001>
module attributes {stable_mosaic.version = 11 : i64} {
  func.func @_pe_add_kernel(%arg0: i32, %arg1: i32, %arg2: memref<2x256xf32, #tpu.memory_space<vmem>>, %arg3: memref<1x256xf32, #tpu.memory_space<vmem>>, %arg4: memref<2x256xf32, #tpu.memory_space<vmem>>) attributes {dimension_semantics = [#tpu.dimension_semantics<parallel>, #tpu.dimension_semantics<parallel>], iteration_bounds = array<i64: 1, 1>, scalar_prefetch = 0 : i64, scratch_operands = 0 : i64, tpu.core_type = #tpu.core_type<tc>, window_params = [{transform_indices = @transform_0, window_bounds = array<i64: 2, 256>}, {transform_indices = @transform_1, window_bounds = array<i64: 1, 256>}, {transform_indices = @transform_2, window_bounds = array<i64: 2, 256>}]} {
    %c0 = arith.constant 0 : index
    %c0_0 = arith.constant 0 : index
    %0 = vector.load %arg2[%c0, %c0_0] : memref<2x256xf32, #tpu.memory_space<vmem>>, vector<2x256xf32>
    %c0_1 = arith.constant 0 : index
    %c0_2 = arith.constant 0 : index
    %1 = vector.load %arg3[%c0_1, %c0_2] : memref<1x256xf32, #tpu.memory_space<vmem>>, vector<1x256xf32>
    %2 = vector.broadcast %1 : vector<1x256xf32> to vector<2x256xf32>
    %3 = arith.addf %0, %2 : vector<2x256xf32>
    %c0_3 = arith.constant 0 : index
    %c0_4 = arith.constant 0 : index
    %4 = vector.load %arg4[%c0_3, %c0_4] : memref<2x256xf32, #tpu.memory_space<vmem>>, vector<2x256xf32>
    tpu.vector_store %arg4[%c0_3, %c0_4], %3 {strides = array<i32>} : memref<2x256xf32, #tpu.memory_space<vmem>>, vector<2x256xf32>,
    return
  }
  func.func @transform_0(%arg0: i32, %arg1: i32) -> (i32, i32) {
    %c0_i32 = arith.constant 0 : i32
    return %arg0, %arg1 : i32, i32
  }
  func.func @transform_1(%arg0: i32, %arg1: i32) -> (i32, i32) {
    %c0_i32 = arith.constant 0 : i32
    %c0_i32_0 = arith.constant 0 : i32
    return %c0_i32, %arg1 : i32, i32
  }
  func.func @transform_2(%arg0: i32, %arg1: i32) -> (i32, i32) {
    %c0_i32 = arith.constant 0 : i32
    return %arg0, %arg1 : i32, i32
  }
}

</mosaic_0001>

<bundles_post_ra>
// kernel: tpu_custom_call.1
= control target key start
LH: loop header
LB: loop body
LE: loop exit
PB: predicated region body
PF: predicated region fallthrough
CT: control target
= control target key end

     0   :  { %7 = vsyncpa [#allocation3], 0  ;;  %s135_s0 = inlined_call_operand.hbm [shape: f32[2,256], index: 0, kind: input, shape index: {}, may-alias: {0,2}]   ;;  %s136_s1 = inlined_call_operand.vmem [shape: f32[1,256], index: 1, kind: input, shape index: {}]   ;;  %s137_s2 = inlined_call_operand.hbm [shape: f32[2,256], index: 2, kind: output, shape index: {}, may-alias: {0,2}]  }
   0x1   :  { %8 = vsyncpa [#allocation4], 0  ;;  %s108_s9 = smov [#allocation2]  }
   0x2   :  { %s15_s10 = sshll.u32 %s108_s9, 4  ;;  %s16_s10 = int_to_ptr.vmem [resolvable:$true] %s15_s10 }
   0x3   :  { %s72_s11 = scalar_lea.vmem %s16_s10, 64  ;;  %p77_p1 = scmp.lt.s32.totalorder %s16_s10, %s16_s10 }
   0x4   :  { %p73_p0 = scmp.ne.s32.totalorder %s16_s10, %s72_s11  ;;  %p78_p2 = scmp.lt.s32.totalorder %s72_s11, %s72_s11 }
   0x6   :  { %p79_p3 = por %p78_p2, %p77_p1 }
   0x8   :  { %p80_p4 = pnand %p79_p3, %p73_p0 }
   0xa   :  { %83 = shalt.err (!%p80_p4)
}
   0xb   :  { %18 = dma.hbm_to_vmem [thread:$0]  %s135_s0, 64, %s16_s10, [#allocation3]  }
   0xc   :  { %104 = dma.done.wait [#allocation3], 64  }
   0xd   :  { %105 = vsyncadd [#allocation3], 4294967232  ;;  %v27_v0 = vlaneseq  ;;  %v109_v1 = vmov 1983009808   ;;  %v25_v7 = vld [vmem:[%s136_s1] sm:$0x3] }
   0xe   :  { %v37_v2 = vunpack.c.l.s4 %v109_v1  ;;  %v24_v12 = vld [vmem:[#allocation2] sm:$0xf]  ;;  %s110_s16 = smov [#allocation5]  }
   0xf   :  { %v28_v3 = vshrl.u32 %v27_v0, 7  ;;  %s52_s0 = sshll.u32 %s110_s16, 4  ;;  %s53_s0 = int_to_ptr.vmem [resolvable:$true] %s52_s0 }
  0x10   :  { %v38_v6 = vunpack.c.0.s8 %v37_v2  ;;  %s84_s17 = scalar_lea.vmem %s53_s0, 64  ;;  %p89_p6 = scmp.lt.s32.totalorder %s53_s0, %s53_s0 }
  0x11   :  { %v29_v4 = vsub.s32 0, %v28_v3  ;;  %v33_v5 = vsub.s32 1, %v28_v3  ;;  %p85_p5 = scmp.ne.s32.totalorder %s53_s0, %s84_s17  ;;  %p90_p7 = scmp.lt.s32.totalorder %s84_s17, %s84_s17 }
  0x12   :  { %v41_v10 = vsub.s32 %v38_v6, %v28_v3 }
  0x13   :  { %v30_v8 = vrot.slane %v25_v7, %v29_v4  ;;  %v34_v9 = vrot.slane %v25_v7, %v33_v5  ;;  %p91_p8 = por %p90_p7, %p89_p6 }
  0x15   :  { %v35_v11 = vcombine.low %v30_v8, %v34_v9  ;;  %p92_p9 = pnand %p91_p8, %p85_p5 }
  0x17   :  { %v42_v13 = vrot.slane %v35_v11, %v41_v10 }
  0x19   :  { %v44_v14 = vadd.f32 %v42_v13, %v24_v12 }
  0x1b   :  { %45 = vst [vmem:[#allocation5] sm:$0xf] %v44_v14 }
  0x1c   :  { %95 = shalt.err (!%p92_p9)
}
  0x1d   :  { %55 = dma.vmem_to_hbm [thread:$0]  %s53_s0, 64, %s137_s2, [#allocation4]  }
  0x1e   :  { %106 = dma.done.wait [#allocation4], 64  }
  0x1f   :  { %107 = vsyncadd [#allocation4], 4294967232 }
  0x20   :  { %59 = vsyncpa [#allocation3], 1 }
  0x21   :  { %60 = vsyncpa [#allocation4], 1 }

</bundles_post_ra>
